<compile_context>
chip_gen: v7x
topology: tpu7x:2x2x1
jax: 0.10.0
libtpu: 0.0.40
codegen_flags: <defaults>
</compile_context>

<pallas_src>
import jax
import jax.numpy as jnp
from jax.experimental import pallas as pl
from jax.experimental.pallas import tpu as pltpu


def _att_kernel(lproj_ref, right_t_ref, mask_ref, w1r_ref, w2_ref,
                attw_ref, att_ref):
    right_t = right_t_ref[...]        # (TB, D, L)  f32
    lproj = lproj_ref[...]            # (TB, H, 1)  f32  (precomputed left @ W1_left^T)
    mask = mask_ref[...]              # (TB, 1, L)  f32, 0 == pad
    w1r = w1r_ref[...]                # (H, D)
    w2 = w2_ref[...]                  # (NH, H)

    tb = right_t.shape[0]

    # h_t[b] = tanh(W1_right @ right[b]^T + left_proj[b])      -> (TB, H, L)
    w1r_b = jnp.broadcast_to(w1r[None], (tb,) + w1r.shape)      # (TB, H, D)
    h = jax.lax.dot_general(
        w1r_b, right_t, (((2,), (1,)), ((0,), (0,))),
        preferred_element_type=jnp.float32)                     # (TB, H, L)
    h = jnp.tanh(h + lproj)                                     # bias bcast over L

    # logits[b] = W2 @ h_t[b]                                   -> (TB, NH, L)
    w2_b = jnp.broadcast_to(w2[None], (tb,) + w2.shape)         # (TB, NH, H)
    logits = jax.lax.dot_general(
        w2_b, h, (((2,), (1,)), ((0,), (0,))),
        preferred_element_type=jnp.float32)                     # (TB, NH, L)

    # masked_fill(mask == 0, -inf), broadcast over heads
    logits = jnp.where(mask == 0.0, -jnp.inf, logits)

    # softmax over L (lane axis); divide -> reciprocal + multiply
    m = jnp.max(logits, axis=-1, keepdims=True)                 # (TB, NH, 1)
    e = jnp.exp(logits - m)                                     # (TB, NH, L)
    denom = jnp.sum(e, axis=-1, keepdims=True)                  # (TB, NH, 1)
    attw = e * pl.reciprocal(denom, approx=False)               # (TB, NH, L)

    # attended_t[b] = attw[b] @ right[b]  (== attw @ right_t^T) -> (TB, NH, D)
    att = jax.lax.dot_general(
        attw, right_t, (((2,), (2,)), ((0,), (0,))),
        preferred_element_type=jnp.float32)                     # (TB, NH, D)

    attw_ref[...] = attw.astype(attw_ref.dtype)                 # lane-dense store
    att_ref[...] = att.astype(att_ref.dtype)                    # lane-dense store


def concat_not_equal_self_att(left, right, mask, w1, w2, *, block_b=8):
    """Pallas implementation of ConcatNotEqualSelfAtt.forward.

    left : (B, X), right : (B, L, D), mask : (B, L) binary (0 == pad)
    w1   : (H, X + D)  (nn.Linear(inp_dim, hid_dim, bias=False).weight)
    w2   : (NH, H)
    Returns (attended (B, D, NH), attention_weights (B, L, NH)).
    """
    B, L, D = right.shape
    X = left.shape[-1]
    H, inp_dim = w1.shape
    NH = w2.shape[0]
    assert inp_dim == X + D

    f32 = jnp.float32
    left = left.astype(f32)
    right = right.astype(f32)
    mask = mask.astype(f32)
    w1 = w1.astype(f32)
    w2 = w2.astype(f32)

    # concat([left, right]) @ W1^T  ==  left @ W1[:, :X]^T + right @ W1[:, X:]^T
    # The left part is batch-wide and L-independent -> hoist it out of the
    # kernel as a single XLA GEMM.
    left_proj = left @ w1[:, :X].T                 # (B, H)
    w1r = w1[:, X:]                                # (H, D)

    # Batch blocking: TB batch elements per grid step (pad B up if needed).
    TB = max(1, min(block_b, B))
    Bp = ((B + TB - 1) // TB) * TB
    pad = Bp - B
    if pad:
        left_proj = jnp.pad(left_proj, ((0, pad), (0, 0)))
        right = jnp.pad(right, ((0, pad), (0, 0), (0, 0)))
        # pad rows get an all-ones mask so their (discarded) softmax is finite
        mask = jnp.pad(mask, ((0, pad), (0, 0)), constant_values=1.0)

    lproj3 = left_proj.reshape(Bp, H, 1)           # bias column per batch
    right_t = jnp.swapaxes(right, 1, 2)            # (Bp, D, L) — transpose once in XLA
    mask3 = mask.reshape(Bp, 1, L)                 # L on lanes

    grid = (Bp // TB,)
    out_shape = (jax.ShapeDtypeStruct((Bp, NH, L), f32),   # attention weights (head-major)
                 jax.ShapeDtypeStruct((Bp, NH, D), f32))   # attended          (head-major)

    attw_t, att_t = pl.pallas_call(
        _att_kernel,
        out_shape=out_shape,
        grid_spec=pltpu.PrefetchScalarGridSpec(
            num_scalar_prefetch=0,
            grid=grid,
            in_specs=[
                pl.BlockSpec((TB, H, 1), lambda b: (b, 0, 0)),   # left projection
                pl.BlockSpec((TB, D, L), lambda b: (b, 0, 0)),   # right (transposed)
                pl.BlockSpec((TB, 1, L), lambda b: (b, 0, 0)),   # mask
                pl.BlockSpec((H, D), lambda b: (0, 0)),          # W1 right columns
                pl.BlockSpec((NH, H), lambda b: (0, 0)),         # W2
            ],
            out_specs=[
                pl.BlockSpec((TB, NH, L), lambda b: (b, 0, 0)),  # attw  (lane-dense)
                pl.BlockSpec((TB, NH, D), lambda b: (b, 0, 0)),  # attended (lane-dense)
            ],
        ),
        compiler_params=pltpu.CompilerParams(
            dimension_semantics=("parallel",),
            vmem_limit_bytes=32 * 1024 * 1024),
    )(lproj3, right_t, mask3, w1r, w2)

    # Back to the PyTorch layout; drop batch padding.
    attention_weights = jnp.swapaxes(attw_t, 1, 2)[:B]   # (B, L, NH)
    attended = jnp.swapaxes(att_t, 1, 2)[:B]             # (B, D, NH)
    return attended, attention_weights


def _reference(left, right, mask, w1, w2):
    """Pure-JAX reference mirroring the PyTorch forward exactly."""
    B, L, D = right.shape
    left_tmp = jnp.broadcast_to(left[:, None, :], (B, L, left.shape[-1]))
    tsr = jnp.concatenate([left_tmp, right], axis=-1)          # (B, L, X+D)
    tmp = jnp.tanh(jnp.einsum("bli,hi->blh", tsr, w1))         # (B, L, H)
    logits = jnp.einsum("blh,nh->bln", tmp, w2)                # (B, L, NH)
    doc_mask = (mask == 0)[:, :, None]
    logits = jnp.where(doc_mask, -jnp.inf, logits)
    attw = jax.nn.softmax(logits, axis=1)                      # (B, L, NH)
    attended = jnp.einsum("bld,bln->bdn", right, attw)         # (B, D, NH)
    return attended, attw


if __name__ == "__main__":
    def run_case(key, B, L, D, X, H, NH, block_b):
        k_left, k_right, k_w1, k_w2, k_len = jax.random.split(key, 5)
        left = jax.random.normal(k_left, (B, X), dtype=jnp.float32)
        right = jax.random.normal(k_right, (B, L, D), dtype=jnp.float32)
        # Binary mask (0 == pad); every row has at least one valid position.
        lens = jax.random.randint(k_len, (B,), 1, L + 1)
        mask = (jnp.arange(L)[None, :] < lens[:, None]).astype(jnp.float32)
        w1 = 0.1 * jax.random.normal(k_w1, (H, X + D), dtype=jnp.float32)
        w2 = 0.1 * jax.random.normal(k_w2, (NH, H), dtype=jnp.float32)

        attended, attw = concat_not_equal_self_att(
            left, right, mask, w1, w2, block_b=block_b)
        jax.block_until_ready((attended, attw))

        ref_attended, ref_attw = _reference(left, right, mask, w1, w2)
        assert attended.shape == (B, D, NH)
        assert attw.shape == (B, L, NH)
        assert jnp.allclose(attended, ref_attended, atol=1e-5, rtol=1e-5)
        assert jnp.allclose(attw, ref_attw, atol=1e-5, rtol=1e-5)

    key = jax.random.PRNGKey(0)
    k1, k2 = jax.random.split(key)
    # Base case (matches the module defaults: num_heads=1).
    run_case(k1, B=2, L=8, D=16, X=16, H=32, NH=1, block_b=8)
    # Exercises multi-head, multiple grid steps, and batch padding.
    run_case(k2, B=3, L=10, D=24, X=8, H=16, NH=2, block_b=2)

    print("KERNEL_OK")
</pallas_src>

<mosaic_0001>
module attributes {stable_mosaic.version = 11 : i64} {
  func.func @_att_kernel(%arg0: i32, %arg1: memref<2x32x1xf32, #tpu.memory_space<vmem>>, %arg2: memref<2x16x8xf32, #tpu.memory_space<vmem>>, %arg3: memref<2x1x8xf32, #tpu.memory_space<vmem>>, %arg4: memref<32x16xf32, #tpu.memory_space<vmem>>, %arg5: memref<1x32xf32, #tpu.memory_space<vmem>>, %arg6: memref<2x1x8xf32, #tpu.memory_space<vmem>>, %arg7: memref<2x1x16xf32, #tpu.memory_space<vmem>>) attributes {dimension_semantics = [#tpu.dimension_semantics<parallel>], iteration_bounds = array<i64: 1>, scalar_prefetch = 0 : i64, scratch_operands = 0 : i64, tpu.core_type = #tpu.core_type<tc>, window_params = [{transform_indices = @transform_0, window_bounds = array<i64: 2, 32, 1>}, {transform_indices = @transform_1, window_bounds = array<i64: 2, 16, 8>}, {transform_indices = @transform_2, window_bounds = array<i64: 2, 1, 8>}, {pipeline_mode = #tpu.pipeline_mode<synchronous>, transform_indices = @transform_3, window_bounds = array<i64: 32, 16>}, {pipeline_mode = #tpu.pipeline_mode<synchronous>, transform_indices = @transform_4, window_bounds = array<i64: 1, 32>}, {transform_indices = @transform_5, window_bounds = array<i64: 2, 1, 8>}, {transform_indices = @transform_6, window_bounds = array<i64: 2, 1, 16>}]} {
    %c0 = arith.constant 0 : index
    %c0_0 = arith.constant 0 : index
    %c0_1 = arith.constant 0 : index
    %0 = vector.load %arg2[%c0, %c0_0, %c0_1] : memref<2x16x8xf32, #tpu.memory_space<vmem>>, vector<2x16x8xf32>
    %c0_2 = arith.constant 0 : index
    %c0_3 = arith.constant 0 : index
    %c0_4 = arith.constant 0 : index
    %1 = vector.load %arg1[%c0_2, %c0_3, %c0_4] : memref<2x32x1xf32, #tpu.memory_space<vmem>>, vector<2x32x1xf32>
    %c0_5 = arith.constant 0 : index
    %c0_6 = arith.constant 0 : index
    %c0_7 = arith.constant 0 : index
    %2 = vector.load %arg3[%c0_5, %c0_6, %c0_7] : memref<2x1x8xf32, #tpu.memory_space<vmem>>, vector<2x1x8xf32>
    %c0_8 = arith.constant 0 : index
    %c0_9 = arith.constant 0 : index
    %3 = vector.load %arg4[%c0_8, %c0_9] : memref<32x16xf32, #tpu.memory_space<vmem>>, vector<32x16xf32>
    %c0_10 = arith.constant 0 : index
    %c0_11 = arith.constant 0 : index
    %4 = vector.load %arg5[%c0_10, %c0_11] : memref<1x32xf32, #tpu.memory_space<vmem>>, vector<1x32xf32>
    %5 = vector.shape_cast %3 : vector<32x16xf32> to vector<1x32x16xf32>
    %6 = vector.shape_cast %5 : vector<1x32x16xf32> to vector<1x32x16xf32>
    %7 = vector.broadcast %6 : vector<1x32x16xf32> to vector<2x32x16xf32>
    %cst = arith.constant dense<0.000000e+00> : vector<2x32x8xf32>
    %8 = tpu.matmul %7, %0, %cst {dimension_numbers = #tpu.dot_dimension_numbers<[2], [1], [1], [2], [0, 0, 0, 1, 1, 2], [0], [0]>} : vector<2x32x16xf32>, vector<2x16x8xf32>, vector<2x32x8xf32> -> vector<2x32x8xf32>
    %9 = vector.broadcast %1 : vector<2x32x1xf32> to vector<2x32x8xf32>
    %10 = arith.addf %8, %9 : vector<2x32x8xf32>
    %11 = math.tanh %10 : vector<2x32x8xf32>
    %12 = vector.shape_cast %4 : vector<1x32xf32> to vector<1x1x32xf32>
    %13 = vector.shape_cast %12 : vector<1x1x32xf32> to vector<1x1x32xf32>
    %14 = vector.broadcast %13 : vector<1x1x32xf32> to vector<2x1x32xf32>
    %cst_12 = arith.constant dense<0.000000e+00> : vector<2x1x8xf32>
    %15 = tpu.matmul %14, %11, %cst_12 {dimension_numbers = #tpu.dot_dimension_numbers<[2], [1], [1], [2], [0, 0, 0, 1, 1, 2], [0], [0]>} : vector<2x1x32xf32>, vector<2x32x8xf32>, vector<2x1x8xf32> -> vector<2x1x8xf32>
    %cst_13 = arith.constant 0.000000e+00 : f32
    %16 = vector.broadcast %cst_13 : f32 to vector<2x1x8xf32>
    %17 = arith.cmpf oeq, %2, %16 : vector<2x1x8xf32>
    %cst_14 = arith.constant 0xFF800000 : f32
    %18 = vector.broadcast %cst_14 : f32 to vector<2x1x8xf32>
    %19 = arith.select %17, %18, %15 : vector<2x1x8xi1>, vector<2x1x8xf32>
    %cst_15 = arith.constant dense<0xFF800000> : vector<2x1xf32>
    %20 = vector.multi_reduction <maximumf>, %19, %cst_15 [2] : vector<2x1x8xf32> to vector<2x1xf32>
    %21 = vector.shape_cast %20 : vector<2x1xf32> to vector<2x1x1xf32>
    %22 = vector.broadcast %21 : vector<2x1x1xf32> to vector<2x1x8xf32>
    %23 = arith.subf %19, %22 : vector<2x1x8xf32>
    %24 = math.exp %23 : vector<2x1x8xf32>
    %cst_16 = arith.constant dense<0.000000e+00> : vector<2x1xf32>
    %25 = vector.multi_reduction <add>, %24, %cst_16 [2] : vector<2x1x8xf32> to vector<2x1xf32>
    %26 = vector.shape_cast %25 : vector<2x1xf32> to vector<2x1x1xf32>
    %27 = tpu.reciprocal %26 : vector<2x1x1xf32> -> vector<2x1x1xf32>
    %28 = vector.broadcast %27 : vector<2x1x1xf32> to vector<2x1x8xf32>
    %29 = arith.mulf %24, %28 : vector<2x1x8xf32>
    %cst_17 = arith.constant dense<0.000000e+00> : vector<2x1x16xf32>
    %30 = tpu.matmul %29, %0, %cst_17 {dimension_numbers = #tpu.dot_dimension_numbers<[2], [2], [1], [1], [0, 0, 0, 1, 1, 1], [0], [0]>} : vector<2x1x8xf32>, vector<2x16x8xf32>, vector<2x1x16xf32> -> vector<2x1x16xf32>
    %c0_18 = arith.constant 0 : index
    %c0_19 = arith.constant 0 : index
    %c0_20 = arith.constant 0 : index
    %31 = vector.load %arg6[%c0_18, %c0_19, %c0_20] : memref<2x1x8xf32, #tpu.memory_space<vmem>>, vector<2x1x8xf32>
    tpu.vector_store %arg6[%c0_18, %c0_19, %c0_20], %29 {strides = array<i32>} : memref<2x1x8xf32, #tpu.memory_space<vmem>>, vector<2x1x8xf32>,
    %c0_21 = arith.constant 0 : index
    %c0_22 = arith.constant 0 : index
    %c0_23 = arith.constant 0 : index
    %32 = vector.load %arg7[%c0_21, %c0_22, %c0_23] : memref<2x1x16xf32, #tpu.memory_space<vmem>>, vector<2x1x16xf32>
    tpu.vector_store %arg7[%c0_21, %c0_22, %c0_23], %30 {strides = array<i32>} : memref<2x1x16xf32, #tpu.memory_space<vmem>>, vector<2x1x16xf32>,
    return
  }
  func.func @transform_0(%arg0: i32) -> (i32, i32, i32) {
    %c0_i32 = arith.constant 0 : i32
    %c0_i32_0 = arith.constant 0 : i32
    %c0_i32_1 = arith.constant 0 : i32
    return %arg0, %c0_i32, %c0_i32_0 : i32, i32, i32
  }
  func.func @transform_1(%arg0: i32) -> (i32, i32, i32) {
    %c0_i32 = arith.constant 0 : i32
    %c0_i32_0 = arith.constant 0 : i32
    %c0_i32_1 = arith.constant 0 : i32
    return %arg0, %c0_i32, %c0_i32_0 : i32, i32, i32
  }
  func.func @transform_2(%arg0: i32) -> (i32, i32, i32) {
    %c0_i32 = arith.constant 0 : i32
    %c0_i32_0 = arith.constant 0 : i32
    %c0_i32_1 = arith.constant 0 : i32
    return %arg0, %c0_i32, %c0_i32_0 : i32, i32, i32
  }
  func.func @transform_3(%arg0: i32) -> (i32, i32) {
    %c0_i32 = arith.constant 0 : i32
    %c0_i32_0 = arith.constant 0 : i32
    %c0_i32_1 = arith.constant 0 : i32
    return %c0_i32, %c0_i32_0 : i32, i32
  }
  func.func @transform_4(%arg0: i32) -> (i32, i32) {
    %c0_i32 = arith.constant 0 : i32
    %c0_i32_0 = arith.constant 0 : i32
    %c0_i32_1 = arith.constant 0 : i32
    return %c0_i32, %c0_i32_0 : i32, i32
  }
  func.func @transform_5(%arg0: i32) -> (i32, i32, i32) {
    %c0_i32 = arith.constant 0 : i32
    %c0_i32_0 = arith.constant 0 : i32
    %c0_i32_1 = arith.constant 0 : i32
    return %arg0, %c0_i32, %c0_i32_0 : i32, i32, i32
  }
  func.func @transform_6(%arg0: i32) -> (i32, i32, i32) {
    %c0_i32 = arith.constant 0 : i32
    %c0_i32_0 = arith.constant 0 : i32
    %c0_i32_1 = arith.constant 0 : i32
    return %arg0, %c0_i32, %c0_i32_0 : i32, i32, i32
  }
}

</mosaic_0001>

<bundles_post_ra>
// kernel: tpu_custom_call.1
= control target key start
LH: loop header
LB: loop body
LE: loop exit
PB: predicated region body
PF: predicated region fallthrough
CT: control target
= control target key end

     0   :  { %12 = vsyncpa [#allocation3], 0  ;;  %vm83_vm0 = vcmask 130048   ;;  %v851_v6 = vmov 0   ;;  %s1003_s0 = inlined_call_operand.vmem [shape: f32[2,32,1], index: 0, kind: input, shape index: {}]   ;;  %s1004_s1 = inlined_call_operand.vmem [shape: f32[2,16,8], index: 1, kind: input, shape index: {}]   ;;  %s1005_s2 = inlined_call_operand.vmem [shape: f32[2,1,8], index: 2, kind: input, shape index: {}]   ;;  %s1006_s3 = inlined_call_operand.vmem [shape: f32[32,16], index: 3, kind: input, shape index: {}]   ;;  %s1007_s4 = inlined_call_operand.vmem [shape: f32[1,32], index: 4, kind: input, shape index: {}]   ;;  %s1008_s5 = inlined_call_operand.hbm [shape: f32[2,1,8], index: 5, kind: output, shape index: {0}]   ;;  %s1009_s6 = inlined_call_operand.hbm [shape: f32[2,1,16], index: 6, kind: output, shape index: {1}]  }
   0x1   :  { %v24_v0 = vld [vmem:[%s1004_s1] sm:$0xff]  ;;  %v25_v1 = vld [vmem:[%s1004_s1 + $0x8] sm:$0xff]  ;;  %v26_v2 = vld [vmem:[%s1004_s1 + $0x10] sm:$0xff]  ;;  %778 = vset.pattern.permute.xlu1 %v851_v6  ;;  %777 = vset.pattern.permute.xlu0 %v851_v6 }
   0x2   :  { %v903_v3 = vpack.c.bf16 %v25_v1, %v24_v0  ;;  %v27_v4 = vld [vmem:[%s1004_s1 + $0x18] sm:$0xff]  ;;  %v38_v5 = vld [vmem:[%s1006_s3] sm:$0xff]  ;;  %v39_v10 = vld [vmem:[%s1006_s3 + $0x8] sm:$0xff] }
   0x3   :  { %v911_v7 = vpack.c.bf16 %v27_v4, %v26_v2  ;;  %689 = vmatprep.mubr.msk.f32.mxu0 %vm83_vm0, %v38_v5  ;;  %699 = vmatprep.mubr.msk.f32.mxu1 %vm83_vm0, %v38_v5  ;;  %v32_v8 = vld [vmem:[%s1003_s0 + $0x20] sm:$0xff]  ;;  %v33_v11 = vld [vmem:[%s1003_s0 + $0x28] sm:$0xff]  ;;  %v40_v12 = vld [vmem:[%s1006_s3 + $0x10] sm:$0xff] }
   0x4   :  { %742 = vmatprep.subr.bf16.mxu0 %v903_v3  ;;  %65 = vperm.xlu1 %778, %v32_v8   ;;  %v28_v9 = vld [vmem:[%s1003_s0] sm:$0xff] }
   0x5   :  { %746 = vmatprep.subr.bf16.mxu1 %v911_v7  ;;  %744 = vmatpush3.bf16.msra.mxu0 %v903_v3 }
   0x6   :  { %748 = vmatpush3.bf16.msra.mxu1 %v911_v7  ;;  %45 = vperm.xlu0 %777, %v28_v9  }
   0x7   :  { %13 = vsyncpa [#allocation5], 0  ;;  %v29_v13 = vld [vmem:[%s1003_s0 + $0x8] sm:$0xff]  ;;  %v41_v14 = vld [vmem:[%s1006_s3 + $0x18] sm:$0xff]  ;;  %v852_v19 = vmov 0.0|0.0   ;;  %vm853_vm1 = vmmov 0  }
   0x8   :  { %690 = vmatmul.mubr.msk.f32.vlgmr.msra.gmra.mrb[0].mxu0 %vm83_vm0, %v39_v10  ;;  %70 = vperm.xlu1 %778, %v33_v11   ;;  %v31_v15 = vld [vmem:[%s1003_s0 + $0x18] sm:$0xff]  ;;  %v30_v16 = vld [vmem:[%s1003_s0 + $0x10] sm:$0xff]  ;;  %v854_v20 = vmov 0.0   ;;  %v42_v57 = vld [vmem:[%s1007_s4] sm:$0x1]  ;;  %vm274_vm2 = vcmask 261120  }
   0x9   :  { %700 = vmatmul.mubr.msk.f32.vlgmr.msra.gmra.mrb[0].mxu1 %vm83_vm0, %v39_v10  ;;  %692 = vmatprep.mubr.msk.f32.mxu0 %vm83_vm0, %v40_v12  ;;  %v35_v17 = vld [vmem:[%s1003_s0 + $0x38] sm:$0xff]  ;;  %v34_v18 = vld [vmem:[%s1003_s0 + $0x30] sm:$0xff]  ;;  %v36_v58 = vld [vmem:[%s1005_s2] sm:$0x1]  ;;  %vm422_vm5 = vcmask 57344   ;;  %vm445_vm6 = vcmask 64512  }
   0xa   :  { %702 = vmatprep.mubr.msk.f32.mxu1 %vm83_vm0, %v40_v12  ;;  %50 = vperm.xlu0 %777, %v29_v13   ;;  %v37_v59 = vld [vmem:[%s1005_s2 + $0x1] sm:$0x1]  ;;  %vm418_vm3 = vcmp.eq.f32.partialorder %v36_v58, 0.0  ;;  %vm763_vm7 = vmpackc.low %vm445_vm6, %vm445_vm6  ;;  %s855_s2 = smov [#allocation2]  }
   0xb   :  { %749 = vmatprep.subr.bf16.mxu0 %v852_v19  ;;  %755 = vmatprep.subr.bf16.mxu1 %v852_v19  ;;  %vm419_vm4 = vcmp.eq.f32.partialorder %v37_v59, 0.0  ;;  %s614_s4 = sshll.u32 %s855_s2, 4  ;;  %s615_s4 = int_to_ptr.vmem [resolvable:$true] %s614_s4 }
   0xc   :  { %693 = vmatmul.mubr.msk.f32.gmra.mrb[2].mxu0 %vm83_vm0, %v41_v14  ;;  %60 = vperm.xlu1 %778, %v31_v15   ;;  %s803_s8 = scalar_lea.vmem %s615_s4, 32  ;;  %p808_p1 = scmp.lt.s32.totalorder %s615_s4, %s615_s4 }
   0xd   :  { %703 = vmatmul.mubr.msk.f32.gmra.mrb[2].mxu1 %vm83_vm0, %v41_v14  ;;  %713 = vmatprep.mubr.msk.f32.mxu0 %vm853_vm1, %v854_v20  ;;  %p804_p0 = scmp.ne.s32.totalorder %s615_s4, %s803_s8  ;;  %p809_p2 = scmp.lt.s32.totalorder %s803_s8, %s803_s8 }
   0xe   :  { %55 = vperm.xlu0 %777, %v30_v16   ;;  %724 = vmatprep.mubr.msk.f32.mxu1 %vm853_vm1, %v854_v20 }
   0xf   :  { %p810_p3 = por %p809_p2, %p808_p1 }
  0x10   :  { %80 = vperm.xlu1 %778, %v35_v17  }
  0x11   :  { %p811_p4 = pnand %p810_p3, %p804_p0 }
  0x12   :  { %75 = vperm.xlu0 %777, %v34_v18  }
  0x83   :  { %v66_v21 = vpop.permute.xlu1 %65 }
  0x85   :  { %v46_v22 = vpop.permute.xlu0 %45 }
  0x87   :  { %v71_v23 = vpop.permute.xlu1 %70 }
  0x89   :  { %v51_v24 = vpop.permute.xlu0 %50 }
  0x8b   :  { %v61_v25 = vpop.permute.xlu1 %60 }
  0x8d   :  { %v56_v26 = vpop.permute.xlu0 %55 }
  0x8f   :  { %v81_v35 = vpop.permute.xlu1 %80 }
  0x91   :  { %v76_v40 = vpop.permute.xlu0 %75 }
  0xdb   :  { %v691_v27 = vpop.f32.mrb[0].mxu0 }
  0xdc   :  { %v168_v28 = vadd.f32 %v691_v27, %v51_v24  ;;  %v701_v29 = vpop.f32.mrb[0].mxu1  ;;  %v162_v30 = vpop.f32.mrb[1].mxu0 }
  0xdd   :  { %v253_v31 = vadd.f32 %v701_v29, %v71_v23  ;;  %v163_v32 = vadd.f32 %v162_v30, %v46_v22  ;;  %v247_v33 = vpop.f32.mrb[1].mxu1 }
  0xde   :  { %779 = vtanh.f32 %v168_v28  ;;  %v248_v34 = vadd.f32 %v247_v33, %v66_v21 }
  0xdf   :  { %781 = vtanh.f32 %v253_v31  ;;  %v694_v36 = vpop.f32.mrb[2].mxu0 }
  0xe0   :  { %783 = vtanh.f32 %v163_v32  ;;  %v178_v37 = vadd.f32 %v694_v36, %v61_v25  ;;  %v704_v38 = vpop.f32.mrb[2].mxu1  ;;  %v172_v39 = vpop.f32.mrb[3].mxu0 }
  0xe1   :  { %785 = vtanh.f32 %v248_v34  ;;  %v263_v41 = vadd.f32 %v704_v38, %v81_v35  ;;  %v173_v42 = vadd.f32 %v172_v39, %v56_v26  ;;  %v257_v43 = vpop.f32.mrb[3].mxu1 }
  0xe2   :  { %787 = vtanh.f32 %v178_v37  ;;  %v258_v44 = vadd.f32 %v257_v43, %v76_v40 }
  0xe3   :  { %789 = vtanh.f32 %v263_v41 }
  0xe4   :  { %791 = vtanh.f32 %v173_v42 }
  0xe5   :  { %793 = vtanh.f32 %v258_v44 }
  0xe8   :  { %v780_v45 = vpop.eup %779 }
  0xe9   :  { %v782_v46 = vpop.eup %781 }
  0xea   :  { %v784_v47 = vpop.eup %783 }
  0xeb   :  { %v786_v48 = vpop.eup %785  ;;  %v750_v49 = vpack.c.bf16 %v780_v45, %v784_v47 }
  0xec   :  { %v788_v50 = vpop.eup %787  ;;  %v756_v51 = vpack.c.bf16 %v782_v46, %v786_v48 }
  0xed   :  { %v790_v52 = vpop.eup %789  ;;  %751 = vmatpush3.bf16.msra.mxu0 %v750_v49 }
  0xee   :  { %v792_v53 = vpop.eup %791  ;;  %757 = vmatpush3.bf16.msra.mxu1 %v756_v51  ;;  %752 = vmatprep.subr.bf16.mxu0 %v852_v19 }
  0xef   :  { %v794_v54 = vpop.eup %793  ;;  %758 = vmatprep.subr.bf16.mxu1 %v852_v19  ;;  %v753_v55 = vpack.c.bf16 %v788_v50, %v792_v53 }
  0xf0   :  { %v759_v56 = vpack.c.bf16 %v790_v52, %v794_v54 }
  0xf1   :  { %754 = vmatpush3.bf16.msra.mxu0 %v753_v55 }
  0xf2   :  { %760 = vmatpush3.bf16.msra.mxu1 %v759_v56  ;;  %761 = vmatprep.subr.bf16.mxu0 %v852_v19 }
  0xf3   :  { %765 = vmatprep.subr.bf16.mxu1 %v852_v19 }
  0xf4   :  { %714 = vmatmul.mubr.msk.f32.vlgmr.msra.gmra.mrb[4].mxu0 %vm274_vm2, %v42_v57 }
  0xf5   :  { %725 = vmatmul.mubr.msk.f32.vlgmr.msra.gmra.mrb[4].mxu1 %vm274_vm2, %v42_v57  ;;  %731 = vmatprep.mubr.msk.f32.mxu0 %vm853_vm1, %v854_v20 }
  0xf6   :  { %738 = vmatprep.mubr.msk.f32.mxu1 %vm853_vm1, %v854_v20 }
  0xfa   :  { %764 = vmatpush3.bf16.xpose.msk.msra.mxu0 %vm763_vm7, %v903_v3 }
  0xfb   :  { %768 = vmatpush3.bf16.xpose.msk.msra.mxu1 %vm763_vm7, %v911_v7 }
 0x1c7   :  { %v344_v60 = vpop.f32.mrb[4].mxu0 }
 0x1c8   :  { %v420_v61 = vsel %vm418_vm3, -inf, %v344_v60  ;;  %v414_v62 = vpop.f32.mrb[4].mxu1  ;;  %v715_v63 = vpop.f32.mrb[5].mxu0 }
 0x1c9   :  { %v421_v0 = vsel %vm419_vm4, -inf, %v414_v62  ;;  %v423_v1 = vsel %vm422_vm5, %v420_v61, -inf  ;;  %v726_v2 = vpop.f32.mrb[5].mxu1 }
 0x1ca   :  { %v426_v4 = vsel %vm422_vm5, %v421_v0, -inf  ;;  %424 = vmax.xlane.f32.xlu0 %v423_v1 }
 0x1cb   :  { %427 = vmax.xlane.f32.xlu1 %v426_v4 }
 0x257   :  { %v425_v5 = vpop.xlane.xlu0 %424 }
 0x258   :  { %v428_v6 = vpop.xlane.xlu1 %427  ;;  %v429_v8 = vsub.f32 %v420_v61, %v425_v5 }
 0x259   :  { %v430_v9 = vsub.f32 %v421_v0, %v428_v6 }
 0x25a   :  { %v431_v10 = vmul.f32 1.442695, %v429_v8 }
 0x25b   :  { %v433_v11 = vmul.f32 1.442695, %v430_v9 }
 0x25c   :  { %795 = vpow2.f32 %v431_v10 }
 0x25d   :  { %797 = vpow2.f32 %v433_v11 }
 0x266   :  { %v796_v12 = vpop.eup %795 }
 0x267   :  { %v435_v13 = vsel %vm422_vm5, %v796_v12, 0.0  ;;  %v798_v14 = vpop.eup %797 }
 0x268   :  { %436 = vadd.xlane.f32.xlu0 %v435_v13  ;;  %v438_v15 = vsel %vm422_vm5, %v798_v14, 0.0 }
 0x26c   :  { %439 = vadd.xlane.f32.xlu0 %v438_v15 }
 0x2f5   :  { %v437_v16 = vpop.xlane.xlu0 %436 }
 0x2f6   :  { %799 = vrcp.f32 %v437_v16 }
 0x2f9   :  { %v440_v17 = vpop.xlane.xlu0 %439 }
 0x2fa   :  { %801 = vrcp.f32 %v440_v17 }
 0x300   :  { %v800_v18 = vpop.eup %799 }
 0x301   :  { %v443_v19 = vmul.f32 %v800_v18, %v796_v12 }
 0x303   :  { %604 = vst.msk [vmem:[#allocation2] sm:$0x1] %vm422_vm5, %v443_v19  ;;  %732 = vmatmul.mubr.msk.f32.vlgmr.msra.gmra.mrb[6].mxu0 %vm445_vm6, %v443_v19 }
 0x304   :  { %v802_v20 = vpop.eup %801 }
 0x305   :  { %v444_v21 = vmul.f32 %v802_v20, %v798_v14 }
 0x307   :  { %605 = vst.msk [vmem:[#allocation2 + $0x1] sm:$0x1] %vm422_vm5, %v444_v21  ;;  %739 = vmatmul.mubr.msk.f32.vlgmr.msra.gmra.mrb[6].mxu1 %vm445_vm6, %v444_v21 }
 0x308   :  { %814 = shalt.err (!%p811_p4)
}
 0x309   :  { %s815_s10 = scalar_lea.hbm %s1008_s5, 32 }
 0x30a   :  { %p816_p5 = scmp.ne.s32.totalorder %s1008_s5, %s815_s10  ;;  %p819_p6 = scmp.lt.u32.totalorder %s815_s10, %s1008_s5 }
 0x30c   :  { %p821_p7 = pnand %p819_p6, %p816_p5 }
 0x30e   :  { %824 = shalt.err (!%p821_p7)
}
 0x30f   :  { %s856_s15 = smov 16   ;;  %s857_s16 = smov 1   ;;  %vm606_vm8 = vcmask 122880  }
 0x310   :  { %620 = dma.vmem_to_hbm [thread:$0]  %s615_s4, 32, %s1008_s5, [#allocation3], %s856_s15, %s856_s15, %s857_s16  }
 0x311   :  { %s858_s19 = smov [#allocation4]  }
 0x312   :  { %s626_s20 = sshll.u32 %s858_s19, 4  ;;  %s627_s20 = int_to_ptr.vmem [resolvable:$true] %s626_s20 }
 0x313   :  { %s825_s21 = scalar_lea.vmem %s627_s20, 32  ;;  %p830_p9 = scmp.lt.s32.totalorder %s627_s20, %s627_s20 }
 0x314   :  { %p826_p8 = scmp.ne.s32.totalorder %s627_s20, %s825_s21  ;;  %p831_p10 = scmp.lt.s32.totalorder %s825_s21, %s825_s21 }
 0x316   :  { %p832_p11 = por %p831_p10, %p830_p9 }
 0x318   :  { %p833_p12 = pnand %p832_p11, %p826_p8 }
 0x3d6   :  { %v521_v3 = vpop.f32.mrb[6].mxu0 }
 0x3d7   :  { %607 = vst.msk [vmem:[#allocation4] sm:$0x1] %vm606_vm8, %v521_v3  ;;  %v733_v7 = vpop.f32.mrb[7].mxu0 }
 0x3da   :  { %v600_v22 = vpop.f32.mrb[6].mxu1 }
 0x3db   :  { %608 = vst.msk [vmem:[#allocation4 + $0x1] sm:$0x1] %vm606_vm8, %v600_v22  ;;  %v740_v23 = vpop.f32.mrb[7].mxu1 }
 0x3dc   :  { %836 = shalt.err (!%p833_p12)
}
 0x3dd   :  { %s837_s5 = scalar_lea.hbm %s1009_s6, 32 }
 0x3de   :  { %p838_p13 = scmp.ne.s32.totalorder %s1009_s6, %s837_s5  ;;  %p841_p0 = scmp.lt.u32.totalorder %s837_s5, %s1009_s6 }
 0x3e0   :  { %p843_p1 = pnand %p841_p0, %p838_p13 }
 0x3e2   :  { %846 = shalt.err (!%p843_p1)
}
 0x3e3   :  { %632 = dma.vmem_to_hbm [thread:$0]  %s627_s20, 32, %s1009_s6, [#allocation5], %s856_s15, %s856_s15, %s857_s16  }
 0x3e4   :  { %847 = dma.done.wait [#allocation3], 32  }
 0x3e5   :  { %848 = vsyncadd [#allocation3], 4294967264 }
 0x3e6   :  { %849 = dma.done.wait [#allocation5], 32  }
 0x3e7   :  { %850 = vsyncadd [#allocation5], 4294967264 }
 0x3e8   :  { %639 = vsyncpa [#allocation3], 1 }
 0x3e9   :  { %640 = vsyncpa [#allocation5], 1 }

</bundles_post_ra>
